<compile_context>
chip_gen: v7x
topology: tpu7x:2x2x1
jax: 0.10.0
libtpu: 0.0.40
codegen_flags: <defaults>
</compile_context>

<pallas_src>
import numpy as np
import jax
import jax.numpy as jnp
from jax.experimental import pallas as pl
from jax.experimental.pallas import tpu as pltpu


def gcn_kernel(adj_ref, w1_ref, b1_ref, w2_ref, b2_ref, out_ref):
    """Single invocation, all graphs resident in VMEM.

    adj_ref: (G, V, V)   w1_ref: (G, V, E)   b1_ref: (G, 1, E)
    w2_ref:  (G, E, EP)  b2_ref: (G, 1, EP)  out_ref: (G, V, EP)
    """
    G = adj_ref.shape[0]
    # Static unroll over the (tiny) graph axis: no grid / pipeline overhead.
    for g in range(G):
        adj = adj_ref[g]                       # (V, V) normalized adjacency

        # ---- layer 1: GraphConvolution(voc_size -> emb_dim), X = I folded ----
        h1 = jnp.dot(adj, w1_ref[g], preferred_element_type=jnp.float32)
        h1 = jnp.maximum(h1 + b1_ref[g], 0.0)  # bias + ReLU, stays (V, E)
        # TODO(synk): nn.Dropout(p=0.3) is identity in eval mode; train-mode
        # random masking is not reproduced here.

        # ---- layer 2: GraphConvolution(emb_dim -> emb_dim), lane-dense out ----
        support2 = jnp.dot(h1, w2_ref[g], preferred_element_type=jnp.float32)   # (V, EP)
        out_ref[g] = (jnp.dot(adj, support2, preferred_element_type=jnp.float32)
                      + b2_ref[g])


def _round_up(n, m):
    return ((n + m - 1) // m) * m


def gcn_prepare_params(w1, b1, w2, b2, x=None):
    """One-time (init-time) parameter prep.

    w1: (G, V, E)  b1: (G, 1, E)  w2: (G, E, E)  b2: (G, 1, E)
    x:  optional (V, V) node features.  If None (the GCN module case,
        X = eye(V)), the first matmul is algebraically eliminated; otherwise it
        is folded into W1 here so the kernel stays identical.

    Only the output-facing columns of w2/b2 are zero-padded to a lane-dense
    width EP (multiple of 128); padded columns stay exactly zero through the
    matmul + bias, so the result is numerically identical.
    """
    if x is not None:
        w1 = jnp.einsum("vu,gue->gve", x, w1)

    E = w1.shape[-1]
    EP = _round_up(E, 128)
    pad_c = EP - E
    w2p = jnp.pad(w2, ((0, 0), (0, 0), (0, pad_c)))
    b2p = jnp.pad(b2, ((0, 0), (0, 0), (0, pad_c)))
    return w1, b1, w2p, b2p, EP


def gcn_forward(adj, w1, b1, w2p, b2p, EP, return_padded=False):
    """Batched GCN forward, all G graphs in one un-gridded pallas_call.

    adj: (G, V, V)   w1: (G, V, E)   b1: (G, 1, E)
    w2p: (G, E, EP)  b2p: (G, 1, EP)  (already padded via gcn_prepare_params)
    Returns (G, V, E) float32 (or the lane-dense (G, V, EP) if return_padded).
    """
    G, V, _ = adj.shape
    E = w1.shape[-1]

    # Advisory cost for XLA scheduling around the custom call (reflects the
    # slimmed padding: only layer-2 matmuls see EP).
    flops = G * (2 * V * V * E + 2 * V * E * EP + 2 * V * V * EP)
    bytes_accessed = 4 * G * (V * V + V * E + E + E * EP + EP + V * EP)
    cost = pl.CostEstimate(flops=flops, transcendentals=0,
                           bytes_accessed=bytes_accessed)

    # No grid: every operand is tiny (~tens of KB total), so the whole problem
    # lives in VMEM for a single invocation on every TPU generation.
    out_p = pl.pallas_call(
        gcn_kernel,
        out_shape=jax.ShapeDtypeStruct((G, V, EP), jnp.float32),
        cost_estimate=cost,
    )(adj, w1, b1, w2p, b2p)

    if return_padded:
        return out_p
    return out_p[:, :, :E]


def normalize_rows(mx):
    """Row-normalize matrix — mirrors GCN.normalize (numpy)."""
    rowsum = np.asarray(mx.sum(1), dtype=np.float64)
    r_inv = np.power(rowsum, -1.0).flatten()
    r_inv[np.isinf(r_inv)] = 0.0
    r_mat_inv = np.diagflat(r_inv)
    return r_mat_inv.dot(mx)


def reference_forward(x, adj, w1, b1, w2, b2):
    """Pure-JAX reference with the full original chain (including X @ W1)."""
    h1 = jnp.maximum(adj @ (x @ w1) + b1, 0.0)
    return adj @ (h1 @ w2) + b2


if __name__ == "__main__":
    voc_size = 32
    emb_dim = 32
    G = 2  # GAMENet has two GCNs: EHR-adjacency and DDI-adjacency

    key = jax.random.PRNGKey(0)

    # Synthetic raw adjacencies (binary, symmetric), then normalize(adj + I)
    adj_np = []
    for g in range(G):
        kg = jax.random.fold_in(key, g)
        raw = np.array(
            (jax.random.uniform(kg, (voc_size, voc_size)) > 0.8).astype(jnp.float32))
        raw = np.maximum(raw, raw.T)
        adj_np.append(normalize_rows(raw + np.eye(voc_size)))
    adj = jnp.asarray(np.stack(adj_np), dtype=jnp.float32)

    # Identity node features, as in GCN.__init__
    x = jnp.eye(voc_size, dtype=jnp.float32)

    # GraphConvolution init: uniform(-stdv, stdv), stdv = 1/sqrt(out_features)
    stdv = 1.0 / np.sqrt(emb_dim)
    kw1, kb1, kw2, kb2 = jax.random.split(jax.random.fold_in(key, 100), 4)
    w1 = jax.random.uniform(kw1, (G, voc_size, emb_dim), minval=-stdv, maxval=stdv,
                            dtype=jnp.float32)
    b1 = jax.random.uniform(kb1, (G, 1, emb_dim), minval=-stdv, maxval=stdv,
                            dtype=jnp.float32)
    w2 = jax.random.uniform(kw2, (G, emb_dim, emb_dim), minval=-stdv, maxval=stdv,
                            dtype=jnp.float32)
    b2 = jax.random.uniform(kb2, (G, 1, emb_dim), minval=-stdv, maxval=stdv,
                            dtype=jnp.float32)

    # One-time param prep (hoisted out of the hot path), then ONE kernel launch
    # to build the constant node-embedding table; reuse `out` across decode steps.
    w1f, b1f, w2p, b2p, EP = gcn_prepare_params(w1, b1, w2, b2)  # x = eye folded away
    out = gcn_forward(adj, w1f, b1f, w2p, b2p, EP)
    out = jax.block_until_ready(out)

    # Reference: full original chain per graph (does NOT skip the X @ W1 matmul)
    ref = jnp.stack([
        reference_forward(x, adj[g], w1[g], b1[g], w2[g], b2[g]) for g in range(G)
    ])
    np.testing.assert_allclose(np.array(out), np.array(ref), rtol=1e-5, atol=1e-5)

    print("KERNEL_OK")
</pallas_src>

<mosaic_0001>
module attributes {stable_mosaic.version = 11 : i64} {
  func.func @gcn_kernel(%arg0: memref<2x32x32xf32, #tpu.memory_space<vmem>>, %arg1: memref<2x32x32xf32, #tpu.memory_space<vmem>>, %arg2: memref<2x1x32xf32, #tpu.memory_space<vmem>>, %arg3: memref<2x32x128xf32, #tpu.memory_space<vmem>>, %arg4: memref<2x1x128xf32, #tpu.memory_space<vmem>>, %arg5: memref<2x32x128xf32, #tpu.memory_space<vmem>>) attributes {dimension_semantics = [], scalar_prefetch = 0 : i64, scratch_operands = 0 : i64, tpu.core_type = #tpu.core_type<tc>} {
    %c0 = arith.constant 0 : index
    %c0_0 = arith.constant 0 : index
    %c0_1 = arith.constant 0 : index
    %0 = vector.load %arg0[%c0, %c0_0, %c0_1] : memref<2x32x32xf32, #tpu.memory_space<vmem>>, vector<1x32x32xf32>
    %1 = vector.shape_cast %0 : vector<1x32x32xf32> to vector<32x32xf32>
    %c0_2 = arith.constant 0 : index
    %c0_3 = arith.constant 0 : index
    %c0_4 = arith.constant 0 : index
    %2 = vector.load %arg1[%c0_2, %c0_3, %c0_4] : memref<2x32x32xf32, #tpu.memory_space<vmem>>, vector<1x32x32xf32>
    %3 = vector.shape_cast %2 : vector<1x32x32xf32> to vector<32x32xf32>
    %cst = arith.constant dense<0.000000e+00> : vector<32x32xf32>
    %4 = tpu.matmul %1, %3, %cst {dimension_numbers = #tpu.dot_dimension_numbers<[1], [0], [0], [1], [0, 0, 1, 1], [], []>} : vector<32x32xf32>, vector<32x32xf32>, vector<32x32xf32> -> vector<32x32xf32>
    %c0_5 = arith.constant 0 : index
    %c0_6 = arith.constant 0 : index
    %c0_7 = arith.constant 0 : index
    %5 = vector.load %arg2[%c0_5, %c0_6, %c0_7] : memref<2x1x32xf32, #tpu.memory_space<vmem>>, vector<1x1x32xf32>
    %6 = vector.shape_cast %5 : vector<1x1x32xf32> to vector<1x32xf32>
    %7 = vector.broadcast %6 : vector<1x32xf32> to vector<32x32xf32>
    %8 = arith.addf %4, %7 : vector<32x32xf32>
    %cst_8 = arith.constant 0.000000e+00 : f32
    %9 = vector.broadcast %cst_8 : f32 to vector<32x32xf32>
    %10 = arith.maximumf %8, %9 : vector<32x32xf32>
    %c0_9 = arith.constant 0 : index
    %c0_10 = arith.constant 0 : index
    %c0_11 = arith.constant 0 : index
    %11 = vector.load %arg3[%c0_9, %c0_10, %c0_11] : memref<2x32x128xf32, #tpu.memory_space<vmem>>, vector<1x32x128xf32>
    %12 = vector.shape_cast %11 : vector<1x32x128xf32> to vector<32x128xf32>
    %cst_12 = arith.constant dense<0.000000e+00> : vector<32x128xf32>
    %13 = tpu.matmul %10, %12, %cst_12 {dimension_numbers = #tpu.dot_dimension_numbers<[1], [0], [0], [1], [0, 0, 1, 1], [], []>} : vector<32x32xf32>, vector<32x128xf32>, vector<32x128xf32> -> vector<32x128xf32>
    %cst_13 = arith.constant dense<0.000000e+00> : vector<32x128xf32>
    %14 = tpu.matmul %1, %13, %cst_13 {dimension_numbers = #tpu.dot_dimension_numbers<[1], [0], [0], [1], [0, 0, 1, 1], [], []>} : vector<32x32xf32>, vector<32x128xf32>, vector<32x128xf32> -> vector<32x128xf32>
    %c0_14 = arith.constant 0 : index
    %c0_15 = arith.constant 0 : index
    %c0_16 = arith.constant 0 : index
    %15 = vector.load %arg4[%c0_14, %c0_15, %c0_16] : memref<2x1x128xf32, #tpu.memory_space<vmem>>, vector<1x1x128xf32>
    %16 = vector.shape_cast %15 : vector<1x1x128xf32> to vector<1x128xf32>
    %17 = vector.broadcast %16 : vector<1x128xf32> to vector<32x128xf32>
    %18 = arith.addf %14, %17 : vector<32x128xf32>
    %c0_17 = arith.constant 0 : index
    %c0_18 = arith.constant 0 : index
    %c0_19 = arith.constant 0 : index
    %19 = vector.load %arg5[%c0_17, %c0_18, %c0_19] : memref<2x32x128xf32, #tpu.memory_space<vmem>>, vector<1x32x128xf32>
    %20 = vector.shape_cast %19 : vector<1x32x128xf32> to vector<32x128xf32>
    %21 = vector.shape_cast %18 : vector<32x128xf32> to vector<1x32x128xf32>
    tpu.vector_store %arg5[%c0_17, %c0_18, %c0_19], %21 {strides = array<i32>} : memref<2x32x128xf32, #tpu.memory_space<vmem>>, vector<1x32x128xf32>,
    %c1 = arith.constant 1 : index
    %c0_20 = arith.constant 0 : index
    %c0_21 = arith.constant 0 : index
    %22 = vector.load %arg0[%c1, %c0_20, %c0_21] : memref<2x32x32xf32, #tpu.memory_space<vmem>>, vector<1x32x32xf32>
    %23 = vector.shape_cast %22 : vector<1x32x32xf32> to vector<32x32xf32>
    %c1_22 = arith.constant 1 : index
    %c0_23 = arith.constant 0 : index
    %c0_24 = arith.constant 0 : index
    %24 = vector.load %arg1[%c1_22, %c0_23, %c0_24] : memref<2x32x32xf32, #tpu.memory_space<vmem>>, vector<1x32x32xf32>
    %25 = vector.shape_cast %24 : vector<1x32x32xf32> to vector<32x32xf32>
    %cst_25 = arith.constant dense<0.000000e+00> : vector<32x32xf32>
    %26 = tpu.matmul %23, %25, %cst_25 {dimension_numbers = #tpu.dot_dimension_numbers<[1], [0], [0], [1], [0, 0, 1, 1], [], []>} : vector<32x32xf32>, vector<32x32xf32>, vector<32x32xf32> -> vector<32x32xf32>
    %c1_26 = arith.constant 1 : index
    %c0_27 = arith.constant 0 : index
    %c0_28 = arith.constant 0 : index
    %27 = vector.load %arg2[%c1_26, %c0_27, %c0_28] : memref<2x1x32xf32, #tpu.memory_space<vmem>>, vector<1x1x32xf32>
    %28 = vector.shape_cast %27 : vector<1x1x32xf32> to vector<1x32xf32>
    %29 = vector.broadcast %28 : vector<1x32xf32> to vector<32x32xf32>
    %30 = arith.addf %26, %29 : vector<32x32xf32>
    %cst_29 = arith.constant 0.000000e+00 : f32
    %31 = vector.broadcast %cst_29 : f32 to vector<32x32xf32>
    %32 = arith.maximumf %30, %31 : vector<32x32xf32>
    %c1_30 = arith.constant 1 : index
    %c0_31 = arith.constant 0 : index
    %c0_32 = arith.constant 0 : index
    %33 = vector.load %arg3[%c1_30, %c0_31, %c0_32] : memref<2x32x128xf32, #tpu.memory_space<vmem>>, vector<1x32x128xf32>
    %34 = vector.shape_cast %33 : vector<1x32x128xf32> to vector<32x128xf32>
    %cst_33 = arith.constant dense<0.000000e+00> : vector<32x128xf32>
    %35 = tpu.matmul %32, %34, %cst_33 {dimension_numbers = #tpu.dot_dimension_numbers<[1], [0], [0], [1], [0, 0, 1, 1], [], []>} : vector<32x32xf32>, vector<32x128xf32>, vector<32x128xf32> -> vector<32x128xf32>
    %cst_34 = arith.constant dense<0.000000e+00> : vector<32x128xf32>
    %36 = tpu.matmul %23, %35, %cst_34 {dimension_numbers = #tpu.dot_dimension_numbers<[1], [0], [0], [1], [0, 0, 1, 1], [], []>} : vector<32x32xf32>, vector<32x128xf32>, vector<32x128xf32> -> vector<32x128xf32>
    %c1_35 = arith.constant 1 : index
    %c0_36 = arith.constant 0 : index
    %c0_37 = arith.constant 0 : index
    %37 = vector.load %arg4[%c1_35, %c0_36, %c0_37] : memref<2x1x128xf32, #tpu.memory_space<vmem>>, vector<1x1x128xf32>
    %38 = vector.shape_cast %37 : vector<1x1x128xf32> to vector<1x128xf32>
    %39 = vector.broadcast %38 : vector<1x128xf32> to vector<32x128xf32>
    %40 = arith.addf %36, %39 : vector<32x128xf32>
    %c1_38 = arith.constant 1 : index
    %c0_39 = arith.constant 0 : index
    %c0_40 = arith.constant 0 : index
    %41 = vector.load %arg5[%c1_38, %c0_39, %c0_40] : memref<2x32x128xf32, #tpu.memory_space<vmem>>, vector<1x32x128xf32>
    %42 = vector.shape_cast %41 : vector<1x32x128xf32> to vector<32x128xf32>
    %43 = vector.shape_cast %40 : vector<32x128xf32> to vector<1x32x128xf32>
    tpu.vector_store %arg5[%c1_38, %c0_39, %c0_40], %43 {strides = array<i32>} : memref<2x32x128xf32, #tpu.memory_space<vmem>>, vector<1x32x128xf32>,
    return
  }
}

</mosaic_0001>

<bundles_post_ra>
// kernel: tpu_custom_call.1
= control target key start
LH: loop header
LB: loop body
LE: loop exit
PB: predicated region body
PF: predicated region fallthrough
CT: control target
= control target key end

     0   :  { %10 = vsyncpa [#allocation3], 0  ;;  %s1186_s0 = inlined_call_operand.hbm [shape: f32[2,32,32], index: 0, kind: input, shape index: {}]   ;;  %s1187_s1 = inlined_call_operand.hbm [shape: f32[2,32,32], index: 1, kind: input, shape index: {}]   ;;  %s1188_s2 = inlined_call_operand.vmem [shape: f32[2,1,32], index: 2, kind: input, shape index: {}]   ;;  %s1189_s3 = inlined_call_operand.hbm [shape: f32[2,32,128], index: 3, kind: input, shape index: {}]   ;;  %s1190_s4 = inlined_call_operand.vmem [shape: f32[2,1,128], index: 4, kind: input, shape index: {}]   ;;  %s1191_s5 = inlined_call_operand.hbm [shape: f32[2,32,128], index: 5, kind: output, shape index: {}]  }
   0x1   :  { %11 = vsyncpa [#allocation6], 0 }
   0x2   :  { %12 = vsyncpa [#allocation4], 0  ;;  %s1023_s18 = smov [#allocation5]   ;;  %s1024_s20 = smov [#allocation2]  }
   0x3   :  { %s30_s19 = sshll.u32 %s1023_s18, 4  ;;  %s18_s21 = sshll.u32 %s1024_s20, 4  ;;  %s31_s19 = int_to_ptr.vmem [resolvable:$true] %s30_s19  ;;  %s1059_s21 = int_to_ptr.vmem [resolvable:$true] %s18_s21 }
   0x4   :  { %s929_s24 = scalar_lea.hbm %s1187_s1, 1024 }
   0x5   :  { %p930_p0 = scmp.ne.s32.totalorder %s1187_s1, %s929_s24  ;;  %p933_p1 = scmp.lt.u32.totalorder %s929_s24, %s1187_s1 }
   0x7   :  { %p935_p2 = pnand %p933_p1, %p930_p0 }
   0x9   :  { %938 = shalt.err (!%p935_p2)
}
   0xa   :  { %s939_s29 = scalar_lea.vmem %s31_s19, 1024  ;;  %p944_p4 = scmp.lt.s32.totalorder %s31_s19, %s31_s19 }
   0xb   :  { %p940_p3 = scmp.ne.s32.totalorder %s31_s19, %s939_s29  ;;  %p945_p5 = scmp.lt.s32.totalorder %s939_s29, %s939_s29 }
   0xd   :  { %p946_p6 = por %p945_p5, %p944_p4 }
   0xf   :  { %p947_p7 = pnand %p946_p6, %p940_p3 }
  0x11   :  { %950 = shalt.err (!%p947_p7)
}
  0x12   :  { %s1025_s30 = smov 128   ;;  %s1026_s6 = smov 8  }
  0x13   :  { %36 = dma.hbm_to_vmem [thread:$0]  %s1187_s1, 1024, %s31_s19, [#allocation6], %s1025_s30, %s1025_s30, %s1026_s6  }
  0x14   :  { %s951_s11 = scalar_lea.hbm %s1186_s0, 1024 }
  0x15   :  { %p952_p8 = scmp.ne.s32.totalorder %s1186_s0, %s951_s11  ;;  %p955_p9 = scmp.lt.u32.totalorder %s951_s11, %s1186_s0 }
  0x17   :  { %p957_p10 = pnand %p955_p9, %p952_p8 }
  0x19   :  { %960 = shalt.err (!%p957_p10)
}
  0x1a   :  { %s961_s16 = scalar_lea.vmem %s1059_s21, 1024  ;;  %p966_p12 = scmp.lt.s32.totalorder %s1059_s21, %s1059_s21 }
  0x1b   :  { %p962_p11 = scmp.ne.s32.totalorder %s1059_s21, %s961_s16  ;;  %p967_p13 = scmp.lt.s32.totalorder %s961_s16, %s961_s16 }
  0x1d   :  { %p968_p0 = por %p967_p13, %p966_p12 }
  0x1f   :  { %p969_p1 = pnand %p968_p0, %p962_p11 }
  0x21   :  { %972 = shalt.err (!%p969_p1)
}
  0x22   :  { %24 = dma.hbm_to_vmem [thread:$0]  %s1186_s0, 1024, %s1059_s21, [#allocation3], %s1025_s30, %s1025_s30, %s1026_s6  }
  0x23   :  { %s1027_s18 = smov [#allocation7]   ;;  %s973_s23 = scalar_lea.hbm %s1189_s3, 1024 }
  0x24   :  { %s44_s19 = sshll.u32 %s1027_s18, 4  ;;  %p974_p2 = scmp.ne.s32.totalorder %s1189_s3, %s973_s23  ;;  %s45_s19 = int_to_ptr.vmem [resolvable:$true] %s44_s19 }
  0x25   :  { %p977_p3 = scmp.lt.u32.totalorder %s973_s23, %s1189_s3 }
  0x27   :  { %p979_p4 = pnand %p977_p3, %p974_p2 }
  0x29   :  { %982 = shalt.err (!%p979_p4)
}
  0x2a   :  { %s983_s28 = scalar_lea.vmem %s45_s19, 1024  ;;  %p988_p6 = scmp.lt.s32.totalorder %s45_s19, %s45_s19 }
  0x2b   :  { %p984_p5 = scmp.ne.s32.totalorder %s45_s19, %s983_s28  ;;  %p989_p7 = scmp.lt.s32.totalorder %s983_s28, %s983_s28 }
  0x2d   :  { %p990_p8 = por %p989_p7, %p988_p6 }
  0x2f   :  { %p991_p9 = pnand %p990_p8, %p984_p5 }
  0x31   :  { %994 = shalt.err (!%p991_p9)
}
  0x32   :  { %50 = dma.hbm_to_vmem [thread:$0]  %s1189_s3, 1024, %s45_s19, [#allocation6], %s1025_s30, %s1025_s30, %s1026_s6  }
  0x33   :  { %1017 = dma.done.wait [#allocation3], 1024  }
  0x34   :  { %1018 = vsyncadd [#allocation3], 4294966272 }
  0x35   :  { %1019 = dma.done.wait [#allocation6], 2048  }
  0x36   :  { %1020 = vsyncadd [#allocation6], 4294965248  ;;  %vm77_vm0 = vcmask 261120   ;;  %v66_v0 = vld [vmem:[#allocation5] sm:$0xff]  ;;  %v67_v1 = vld [vmem:[#allocation5 + $0x8] sm:$0xff]  ;;  %s1028_s12 = smov [#allocation8]  }
  0x37   :  { %v68_v2 = vld [vmem:[#allocation5 + $0x10] sm:$0xff]  ;;  %v875_v3 = vpack.c.bf16 %v67_v1, %v66_v0  ;;  %v69_v4 = vld [vmem:[#allocation5 + $0x18] sm:$0xff]  ;;  %v62_v5 = vld [vmem:[#allocation2] sm:$0xff]  ;;  %s700_s13 = sshll.u32 %s1028_s12, 4  ;;  %s701_s13 = int_to_ptr.vmem [resolvable:$true] %s700_s13 }
  0x38   :  { %v879_v6 = vpack.c.bf16 %v69_v4, %v68_v2  ;;  %799 = vmatprep.mubr.msk.f32.mxu0 %vm77_vm0, %v62_v5  ;;  %v179_v7 = vld [vmem:[#allocation7] sm:$0xff]  ;;  %v180_v8 = vld [vmem:[#allocation7 + $0x8] sm:$0xff]  ;;  %v1114_v11 = vld [vmem:[#allocation2 + $0x10] sm:$0xff]  ;;  %s995_s14 = scalar_lea.vmem %s701_s13, 1024  ;;  %p1000_p11 = scmp.lt.s32.totalorder %s701_s13, %s701_s13 }
  0x39   :  { %876 = vmatprep.subr.bf16.mxu0 %v875_v3  ;;  %v883_v9 = vpack.c.bf16 %v180_v8, %v179_v7  ;;  %v1112_v10 = vld [vmem:[#allocation2 + $0x8] sm:$0xff]  ;;  %v1120_v12 = vld [vmem:[#allocation2 + $0x18] sm:$0xff]  ;;  %v181_v13 = vld [vmem:[#allocation7 + $0x10] sm:$0xff]  ;;  %p996_p10 = scmp.ne.s32.totalorder %s701_s13, %s995_s14  ;;  %p1001_p12 = scmp.lt.s32.totalorder %s995_s14, %s995_s14 }
  0x3a   :  { %878 = vmatpush3.bf16.msra.mxu0 %v875_v3  ;;  %v182_v14 = vld [vmem:[#allocation7 + $0x18] sm:$0xff]  ;;  %v382_v16 = vld [vmem:[#allocation5 + $0x20] sm:$0xff]  ;;  %v383_v17 = vld [vmem:[#allocation5 + $0x28] sm:$0xff] }
  0x3b   :  { %880 = vmatprep.subr.bf16.mxu0 %v879_v6  ;;  %884 = vmatprep.subr.bf16.mxu1 %v883_v9  ;;  %v887_v15 = vpack.c.bf16 %v182_v14, %v181_v13  ;;  %v899_v18 = vpack.c.bf16 %v383_v17, %v382_v16  ;;  %v713_v19 = vld [vmem:[%s1188_s2] ss:$0 sm:$0xff]  ;;  %v384_v24 = vld [vmem:[#allocation5 + $0x30] sm:$0xff]  ;;  %v385_v25 = vld [vmem:[#allocation5 + $0x38] sm:$0xff]  ;;  %p1002_p13 = por %p1001_p12, %p1000_p11 }
  0x3c   :  { %886 = vmatpush3.bf16.msra.mxu1 %v883_v9  ;;  %v903_v31 = vpack.c.bf16 %v385_v25, %v384_v24  ;;  %v377_v35 = vld [vmem:[#allocation2 + $0x20] sm:$0xff]  ;;  %v1133_v36 = vld [vmem:[#allocation2 + $0x28] sm:$0xff]  ;;  %v1135_v37 = vld [vmem:[#allocation2 + $0x30] sm:$0xff] }
  0x3d   :  { %888 = vmatprep.subr.bf16.mxu1 %v887_v15  ;;  %v1141_v38 = vld [vmem:[#allocation2 + $0x38] sm:$0xff]  ;;  %v496_v42 = vld [vmem:[#allocation7 + $0x20] sm:$0xff]  ;;  %v497_v43 = vld [vmem:[#allocation7 + $0x28] sm:$0xff]  ;;  %p1003_p0 = pnand %p1002_p13, %p996_p10 }
  0x3e   :  { %882 = vmatpush3.bf16.msra.mxu0 %v879_v6  ;;  %v907_v47 = vpack.c.bf16 %v497_v43, %v496_v42  ;;  %v728_v48 = vld [vmem:[%s1188_s2 + $0x1] ss:$0 sm:$0xff]  ;;  %v498_v49 = vld [vmem:[#allocation7 + $0x30] sm:$0xff]  ;;  %v499_v50 = vld [vmem:[#allocation7 + $0x38] sm:$0xff] }
  0x3f   :  { %v911_v54 = vpack.c.bf16 %v499_v50, %v498_v49  ;;  %v722_v0 = vld [vmem:[%s1190_s4] ss:$0 sm:$0xff] }
  0x40   :  { %890 = vmatpush3.bf16.msra.mxu1 %v887_v15  ;;  %v738_v15 = vld [vmem:[%s1190_s4 + $0x1] ss:$0 sm:$0xff] }
  0x41   :  { %800 = vmatmul.mubr.msk.f32.vlgmr.msra.gmra.mrb[0].mxu0 %vm77_vm0, %v1112_v10  ;;  %900 = vmatprep.subr.bf16.mxu1 %v899_v18 }
  0x42   :  { %802 = vmatprep.mubr.msk.f32.mxu0 %vm77_vm0, %v1114_v11 }
  0x45   :  { %803 = vmatmul.mubr.msk.f32.gmra.mrb[2].mxu0 %vm77_vm0, %v1120_v12 }
  0x46   :  { %827 = vmatprep.mubr.msk.f32.mxu0 %vm77_vm0, %v62_v5 }
 0x114   :  { %v801_v20 = vpop.f32.mrb[0].mxu0 }
 0x115   :  { %v162_v21 = vadd.f32 %v801_v20, %v713_v19  ;;  %v156_v22 = vpop.f32.mrb[1].mxu0 }
 0x116   :  { %v157_v23 = vadd.f32 %v713_v19, %v156_v22 }
 0x117   :  { %v176_v28 = vmax.f32 %v162_v21, 0.0 }
 0x118   :  { %v175_v26 = vmax.f32 %v157_v23, 0.0  ;;  %v804_v27 = vpop.f32.mrb[2].mxu0 }
 0x119   :  { %v172_v29 = vadd.f32 %v804_v27, %v713_v19  ;;  %v166_v30 = vpop.f32.mrb[3].mxu0 }
 0x11a   :  { %v167_v32 = vadd.f32 %v713_v19, %v166_v30  ;;  %813 = vmatprep.mubr.msk.f32.mxu1 %vm77_vm0, %v175_v26 }
 0x11b   :  { %814 = vmatmul.mubr.msk.f32.vlgmr.msra.gmra.mrb[0].mxu1 %vm77_vm0, %v176_v28  ;;  %v178_v34 = vmax.f32 %v172_v29, 0.0 }
 0x11c   :  { %v177_v33 = vmax.f32 %v167_v32, 0.0  ;;  %902 = vmatpush3.bf16.msra.mxu1 %v899_v18 }
 0x11d   :  { %904 = vmatprep.subr.bf16.mxu1 %v903_v31 }
 0x11e   :  { %816 = vmatprep.mubr.msk.f32.mxu1 %vm77_vm0, %v177_v33 }
 0x11f   :  { %817 = vmatmul.mubr.msk.f32.gmra.mrb[2].mxu1 %vm77_vm0, %v178_v34 }
 0x120   :  { %906 = vmatpush3.bf16.msra.mxu1 %v903_v31  ;;  %841 = vmatprep.mubr.msk.f32.mxu1 %vm77_vm0, %v377_v35 }
 0x123   :  { %842 = vmatmul.mubr.msk.f32.vlgmr.msra.gmra.mrb[4].mxu1 %vm77_vm0, %v1133_v36 }
 0x124   :  { %844 = vmatprep.mubr.msk.f32.mxu1 %vm77_vm0, %v1135_v37 }
 0x127   :  { %845 = vmatmul.mubr.msk.f32.gmra.mrb[6].mxu1 %vm77_vm0, %v1141_v38 }
 0x128   :  { %869 = vmatprep.mubr.msk.f32.mxu1 %vm77_vm0, %v377_v35 }
 0x1ee   :  { %v815_v39 = vpop.f32.mrb[0].mxu1 }
 0x1ef   :  { %v261_v40 = vpop.f32.mrb[1].mxu1 }
 0x1f0   :  { %v891_v41 = vpack.c.bf16 %v815_v39, %v261_v40 }
 0x1f2   :  { %v818_v44 = vpop.f32.mrb[2].mxu1  ;;  %892 = vmatprep.subr.bf16.mxu0 %v891_v41 }
 0x1f3   :  { %v271_v45 = vpop.f32.mrb[3].mxu1  ;;  %894 = vmatpush3.bf16.msra.mxu0 %v891_v41 }
 0x1f4   :  { %v895_v46 = vpack.c.bf16 %v818_v44, %v271_v45 }
 0x1f6   :  { %896 = vmatprep.subr.bf16.mxu0 %v895_v46  ;;  %v843_v51 = vpop.f32.mrb[4].mxu1 }
 0x1f7   :  { %898 = vmatpush3.bf16.msra.mxu0 %v895_v46  ;;  %v472_v52 = vpop.f32.mrb[5].mxu1  ;;  %v478_v58 = vadd.f32 %v843_v51, %v728_v48 }
 0x1f8   :  { %908 = vmatprep.subr.bf16.mxu0 %v907_v47  ;;  %v473_v53 = vadd.f32 %v728_v48, %v472_v52 }
 0x1f9   :  { %v492_v61 = vmax.f32 %v478_v58, 0.0 }
 0x1fa   :  { %828 = vmatmul.mubr.msk.f32.vlgmr.msra.gmra.mrb[4].mxu0 %vm77_vm0, %v1112_v10  ;;  %v846_v55 = vpop.f32.mrb[6].mxu1  ;;  %v491_v56 = vmax.f32 %v473_v53, 0.0 }
 0x1fb   :  { %910 = vmatpush3.bf16.msra.mxu0 %v907_v47  ;;  %830 = vmatprep.mubr.msk.f32.mxu0 %vm77_vm0, %v1114_v11  ;;  %v482_v57 = vpop.f32.mrb[7].mxu1  ;;  %v488_v62 = vadd.f32 %v846_v55, %v728_v48 }
 0x1fc   :  { %912 = vmatprep.subr.bf16.mxu0 %v911_v54  ;;  %v483_v59 = vadd.f32 %v728_v48, %v482_v57 }
 0x1fd   :  { %v494_v63 = vmax.f32 %v488_v62, 0.0 }
 0x1fe   :  { %831 = vmatmul.mubr.msk.f32.gmra.mrb[6].mxu0 %vm77_vm0, %v1120_v12  ;;  %v493_v60 = vmax.f32 %v483_v59, 0.0 }
 0x1ff   :  { %914 = vmatpush3.bf16.msra.mxu0 %v911_v54  ;;  %855 = vmatprep.mubr.msk.f32.mxu0 %vm77_vm0, %v491_v56 }
 0x202   :  { %856 = vmatmul.mubr.msk.f32.vlgmr.msra.gmra.mrb[8].mxu0 %vm77_vm0, %v492_v61 }
 0x203   :  { %858 = vmatprep.mubr.msk.f32.mxu0 %vm77_vm0, %v493_v60 }
 0x206   :  { %859 = vmatmul.mubr.msk.f32.gmra.mrb[10].mxu0 %vm77_vm0, %v494_v63 }
 0x2cd   :  { %v829_v1 = vpop.f32.mrb[4].mxu0 }
 0x2ce   :  { %v359_v2 = vadd.f32 %v829_v1, %v722_v0  ;;  %v353_v3 = vpop.f32.mrb[5].mxu0 }
 0x2cf   :  { %v354_v4 = vadd.f32 %v722_v0, %v353_v3 }
 0x2d0   :  { %373 = vst [vmem:[#allocation8 + $0x8] sm:$0xff] %v359_v2 }
 0x2d1   :  { %372 = vst [vmem:[#allocation8] sm:$0xff] %v354_v4  ;;  %v832_v5 = vpop.f32.mrb[6].mxu0 }
 0x2d2   :  { %v369_v6 = vadd.f32 %v832_v5, %v722_v0  ;;  %v363_v7 = vpop.f32.mrb[7].mxu0 }
 0x2d3   :  { %v364_v8 = vadd.f32 %v722_v0, %v363_v7 }
 0x2d4   :  { %375 = vst [vmem:[#allocation8 + $0x18] sm:$0xff] %v369_v6 }
 0x2d5   :  { %374 = vst [vmem:[#allocation8 + $0x10] sm:$0xff] %v364_v8  ;;  %v857_v9 = vpop.f32.mrb[8].mxu0 }
 0x2d6   :  { %v578_v10 = vpop.f32.mrb[9].mxu0 }
 0x2d7   :  { %v915_v11 = vpack.c.bf16 %v857_v9, %v578_v10 }
 0x2d9   :  { %v860_v12 = vpop.f32.mrb[10].mxu0  ;;  %916 = vmatprep.subr.bf16.mxu1 %v915_v11 }
 0x2da   :  { %v588_v13 = vpop.f32.mrb[11].mxu0  ;;  %918 = vmatpush3.bf16.msra.mxu1 %v915_v11 }
 0x2db   :  { %v919_v14 = vpack.c.bf16 %v860_v12, %v588_v13 }
 0x2dd   :  { %920 = vmatprep.subr.bf16.mxu1 %v919_v14 }
 0x2de   :  { %922 = vmatpush3.bf16.msra.mxu1 %v919_v14 }
 0x2e1   :  { %870 = vmatmul.mubr.msk.f32.vlgmr.msra.gmra.mrb[8].mxu1 %vm77_vm0, %v1133_v36 }
 0x2e2   :  { %872 = vmatprep.mubr.msk.f32.mxu1 %vm77_vm0, %v1135_v37 }
 0x2e5   :  { %873 = vmatmul.mubr.msk.f32.gmra.mrb[10].mxu1 %vm77_vm0, %v1141_v38 }
 0x3b4   :  { %v871_v16 = vpop.f32.mrb[8].mxu1 }
 0x3b5   :  { %v677_v17 = vadd.f32 %v871_v16, %v738_v15  ;;  %v671_v18 = vpop.f32.mrb[9].mxu1 }
 0x3b6   :  { %v672_v19 = vadd.f32 %v738_v15, %v671_v18 }
 0x3b7   :  { %692 = vst [vmem:[#allocation8 + $0x28] sm:$0xff] %v677_v17 }
 0x3b8   :  { %691 = vst [vmem:[#allocation8 + $0x20] sm:$0xff] %v672_v19  ;;  %v874_v20 = vpop.f32.mrb[10].mxu1 }
 0x3b9   :  { %v687_v21 = vadd.f32 %v874_v20, %v738_v15  ;;  %v681_v22 = vpop.f32.mrb[11].mxu1 }
 0x3ba   :  { %v682_v23 = vadd.f32 %v738_v15, %v681_v22 }
 0x3bb   :  { %694 = vst [vmem:[#allocation8 + $0x38] sm:$0xff] %v687_v21 }
 0x3bc   :  { %693 = vst [vmem:[#allocation8 + $0x30] sm:$0xff] %v682_v23 }
 0x3bd   :  { %1006 = shalt.err (!%p1003_p0)
}
 0x3be   :  { %s1007_s16 = scalar_lea.hbm %s1191_s5, 1024 }
 0x3bf   :  { %p1008_p1 = scmp.ne.s32.totalorder %s1191_s5, %s1007_s16  ;;  %p1011_p2 = scmp.lt.u32.totalorder %s1007_s16, %s1191_s5 }
 0x3c1   :  { %p1013_p3 = pnand %p1011_p2, %p1008_p1 }
 0x3c3   :  { %1016 = shalt.err (!%p1013_p3)
}
 0x3c4   :  { %706 = dma.vmem_to_hbm [thread:$0]  %s701_s13, 1024, %s1191_s5, [#allocation4], %s1025_s30, %s1025_s30, %s1026_s6  }
 0x3c5   :  { %1021 = dma.done.wait [#allocation4], 1024  }
 0x3c6   :  { %1022 = vsyncadd [#allocation4], 4294966272 }
 0x3c7   :  { %710 = vsyncpa [#allocation3], 1 }
 0x3c8   :  { %711 = vsyncpa [#allocation6], 1 }
 0x3c9   :  { %712 = vsyncpa [#allocation4], 1 }

</bundles_post_ra>
